<compile_context>
chip_gen: v6e
topology: v6e:2x2x1
jax: 0.10.0
libtpu: 0.0.40
codegen_flags: <defaults>
</compile_context>

<pallas_src>
import jax
import jax.numpy as jnp
from jax.experimental import pallas as pl
from jax.experimental.pallas import tpu as pltpu

INPUT_SIZE = 3
HIDDEN_SIZE = 128
OUTPUT_SIZE = 3

TB_MAX = 2048          # batch-tile cap (review: raise from 512; sweep 2048-4096)
TARGET_GRID_STEPS = 4  # >=2 so both v7x TCs engage; >=2/core keeps the pipeline busy


def _round_up(x, m):
    return ((x + m - 1) // m) * m


def _sigmoid(x):
    # sigmoid(x) == 0.5 * tanh(0.5 * x) + 0.5  -> single EUP op (vs exp + recip).
    return 0.5 * jnp.tanh(0.5 * x) + 0.5


def harmonizer_lstm_kernel(x_ref, w_ih_ref, bias_ref, w_fc_t_ref, b_fc_ref, out_ref):
    """One batch tile: single LSTM cell step (h0 = c0 = 0) + fc layer."""
    H = HIDDEN_SIZE
    x = x_ref[...]                                   # (tb, 3)
    w = w_ih_ref[...]                                # (3, 3H)  columns: i | g | o

    # gates = bias + x @ W_ih^T, but K == 3 so do it as 3 broadcast FMAs on the
    # VPU instead of pushing a near-empty pass through the MXU.
    gates = bias_ref[...]                            # (1, 3H) -> broadcasts to (tb, 3H)
    gates = gates + x[:, 0:1] * w[0:1, :]
    gates = gates + x[:, 1:2] * w[1:2, :]
    gates = gates + x[:, 2:3] * w[2:3, :]            # (tb, 3H)

    i_g = _sigmoid(gates[:, 0 * H:1 * H])            # input gate
    g_g = jnp.tanh(gates[:, 1 * H:2 * H])            # cell candidate
    o_g = _sigmoid(gates[:, 2 * H:3 * H])            # output gate
    # forget gate multiplies c0 == 0 -> its columns were dropped wrapper-side.

    c1 = i_g * g_g
    h1 = o_g * jnp.tanh(c1)                          # (tb, H)

    # Final Linear: narrow-N matmul against the un-padded (H, 3) W_fc^T.
    # Writes only the 3 real output columns (no 128-lane padding, no wrapper
    # slice pass over a padded array).
    out_ref[...] = (jnp.dot(h1, w_fc_t_ref[...],
                            preferred_element_type=jnp.float32)
                    + b_fc_ref[...])                 # (tb, 3)


def _choose_tile(batch):
    """Batch-tile size: multiple of 8, <= TB_MAX, aiming for >= TARGET_GRID_STEPS
    grid steps so the parallel batch axis shards across both v7x TensorCores."""
    tb = _round_up(max(1, pl.cdiv(batch, TARGET_GRID_STEPS)), 8)
    return max(8, min(TB_MAX, tb))


def harmonizer_lstm_forward(x, w_ih_t, bias, w_fc_t, b_fc):
    """x: (B, 3) f32 -> (B, 3) f32."""
    B = x.shape[0]
    H = HIDDEN_SIZE
    G = 3 * H                                        # i|g|o columns only

    tb = _choose_tile(B)
    b_pad = _round_up(B, tb)
    if b_pad != B:
        x = jnp.pad(x, ((0, b_pad - B), (0, 0)))     # padded rows are sliced away below
    grid = (b_pad // tb,)

    flops = 2 * b_pad * INPUT_SIZE * G + 2 * b_pad * H * OUTPUT_SIZE
    transcendentals = 4 * b_pad * H                  # 3 gate tanh + tanh(c1) per row
    bytes_accessed = 4 * (b_pad * INPUT_SIZE + INPUT_SIZE * G + G
                          + H * OUTPUT_SIZE + OUTPUT_SIZE
                          + b_pad * OUTPUT_SIZE)

    out = pl.pallas_call(
        harmonizer_lstm_kernel,
        out_shape=jax.ShapeDtypeStruct((b_pad, OUTPUT_SIZE), jnp.float32),
        grid_spec=pltpu.PrefetchScalarGridSpec(
            num_scalar_prefetch=0,
            grid=grid,
            in_specs=[
                pl.BlockSpec((tb, INPUT_SIZE), lambda i: (i, 0)),        # x tile
                pl.BlockSpec((INPUT_SIZE, G), lambda i: (0, 0)),         # W_ih^T (pinned)
                pl.BlockSpec((1, G), lambda i: (0, 0)),                  # bias   (pinned)
                pl.BlockSpec((H, OUTPUT_SIZE), lambda i: (0, 0)),        # W_fc^T (pinned)
                pl.BlockSpec((1, OUTPUT_SIZE), lambda i: (0, 0)),        # b_fc   (pinned)
            ],
            out_specs=pl.BlockSpec((tb, OUTPUT_SIZE), lambda i: (i, 0)),  # narrow output
        ),
        compiler_params=pltpu.CompilerParams(
            dimension_semantics=("parallel",),
            vmem_limit_bytes=32 * 1024 * 1024,       # v5e default is 16 MiB; tb=2048 needs ~16 MiB
        ),
        cost_estimate=pl.CostEstimate(flops=flops,
                                      transcendentals=transcendentals,
                                      bytes_accessed=bytes_accessed),
    )(x, w_ih_t, bias, w_fc_t, b_fc)

    return out[:B]                                   # drop padded rows only


def init_params(key):
    """Full PyTorch-shaped parameters (default U(-1/sqrt(H), 1/sqrt(H)) init)."""
    H, I, O = HIDDEN_SIZE, INPUT_SIZE, OUTPUT_SIZE
    k = 1.0 / jnp.sqrt(jnp.float32(H))
    keys = jax.random.split(key, 6)
    return dict(
        w_ih=jax.random.uniform(keys[0], (4 * H, I), jnp.float32, -k, k),
        w_hh=jax.random.uniform(keys[1], (4 * H, H), jnp.float32, -k, k),  # dead: h0 == 0
        b_ih=jax.random.uniform(keys[2], (4 * H,), jnp.float32, -k, k),
        b_hh=jax.random.uniform(keys[3], (4 * H,), jnp.float32, -k, k),
        w_fc=jax.random.uniform(keys[4], (O, H), jnp.float32, -k, k),
        b_fc=jax.random.uniform(keys[5], (O,), jnp.float32, -k, k),
    )


def pack_params(p):
    """Wrapper-side repack: drop dead forget-gate columns; fc stays un-padded."""
    H, O = HIDDEN_SIZE, OUTPUT_SIZE

    w_ih_t_full = jnp.transpose(p["w_ih"])                     # (3, 4H), cols i|f|g|o
    bias_full = (p["b_ih"] + p["b_hh"]).reshape(1, 4 * H)      # (1, 4H)

    def keep_igo(a):   # drop the f block (columns H:2H)
        return jnp.concatenate(
            [a[:, 0 * H:1 * H], a[:, 2 * H:3 * H], a[:, 3 * H:4 * H]], axis=1)

    w_ih_t = keep_igo(w_ih_t_full)                             # (3, 3H)
    bias = keep_igo(bias_full)                                 # (1, 3H)

    w_fc_t = jnp.transpose(p["w_fc"])                          # (H, 3)
    b_fc = p["b_fc"].reshape(1, O)                             # (1, 3)

    return w_ih_t, bias, w_fc_t, b_fc


def reference_forward(x, p):
    """Pure-JAX reference of the FULL PyTorch LSTM cell (h0 = c0 = 0) + fc."""
    H = HIDDEN_SIZE
    h0 = jnp.zeros((x.shape[0], H), jnp.float32)
    c0 = jnp.zeros((x.shape[0], H), jnp.float32)
    gates = x @ p["w_ih"].T + h0 @ p["w_hh"].T + p["b_ih"] + p["b_hh"]
    i = jax.nn.sigmoid(gates[:, 0 * H:1 * H])
    f = jax.nn.sigmoid(gates[:, 1 * H:2 * H])
    g = jnp.tanh(gates[:, 2 * H:3 * H])
    o = jax.nn.sigmoid(gates[:, 3 * H:4 * H])
    c1 = f * c0 + i * g
    h1 = o * jnp.tanh(c1)
    return h1 @ p["w_fc"].T + p["b_fc"]


if __name__ == "__main__":
    key = jax.random.PRNGKey(0)
    k_x, k_p = jax.random.split(key)

    params = init_params(k_p)
    packed = pack_params(params)

    # Small aligned batch.
    B = 8
    x = jax.random.normal(k_x, (B, INPUT_SIZE), dtype=jnp.float32)
    y = jax.block_until_ready(harmonizer_lstm_forward(x, *packed))
    y_ref = reference_forward(x, params)
    assert y.shape == (B, OUTPUT_SIZE)
    assert jnp.allclose(y, y_ref, atol=1e-5, rtol=1e-5)

    # Small unaligned batch (exercises the row-padding + [:B] slice path).
    B2 = 5
    x2 = x[:B2]
    y2 = jax.block_until_ready(harmonizer_lstm_forward(x2, *packed))
    y2_ref = reference_forward(x2, params)
    assert y2.shape == (B2, OUTPUT_SIZE)
    assert jnp.allclose(y2, y2_ref, atol=1e-5, rtol=1e-5)

    print("KERNEL_OK")
</pallas_src>

<mosaic_0001>
module attributes {stable_mosaic.version = 11 : i64} {
  func.func @harmonizer_lstm_kernel(%arg0: i32, %arg1: memref<8x3xf32, #tpu.memory_space<vmem>>, %arg2: memref<3x384xf32, #tpu.memory_space<vmem>>, %arg3: memref<1x384xf32, #tpu.memory_space<vmem>>, %arg4: memref<128x3xf32, #tpu.memory_space<vmem>>, %arg5: memref<1x3xf32, #tpu.memory_space<vmem>>, %arg6: memref<8x3xf32, #tpu.memory_space<vmem>>) attributes {dimension_semantics = [#tpu.dimension_semantics<parallel>], iteration_bounds = array<i64: 1>, scalar_prefetch = 0 : i64, scratch_operands = 0 : i64, tpu.core_type = #tpu.core_type<tc>, window_params = [{transform_indices = @transform_0, window_bounds = array<i64: 8, 3>}, {pipeline_mode = #tpu.pipeline_mode<synchronous>, transform_indices = @transform_1, window_bounds = array<i64: 3, 384>}, {pipeline_mode = #tpu.pipeline_mode<synchronous>, transform_indices = @transform_2, window_bounds = array<i64: 1, 384>}, {pipeline_mode = #tpu.pipeline_mode<synchronous>, transform_indices = @transform_3, window_bounds = array<i64: 128, 3>}, {pipeline_mode = #tpu.pipeline_mode<synchronous>, transform_indices = @transform_4, window_bounds = array<i64: 1, 3>}, {transform_indices = @transform_5, window_bounds = array<i64: 8, 3>}]} {
    %c0 = arith.constant 0 : index
    %c0_0 = arith.constant 0 : index
    %0 = vector.load %arg1[%c0, %c0_0] : memref<8x3xf32, #tpu.memory_space<vmem>>, vector<8x3xf32>
    %c0_1 = arith.constant 0 : index
    %c0_2 = arith.constant 0 : index
    %1 = vector.load %arg2[%c0_1, %c0_2] : memref<3x384xf32, #tpu.memory_space<vmem>>, vector<3x384xf32>
    %c0_3 = arith.constant 0 : index
    %c0_4 = arith.constant 0 : index
    %2 = vector.load %arg3[%c0_3, %c0_4] : memref<1x384xf32, #tpu.memory_space<vmem>>, vector<1x384xf32>
    %3 = vector.extract_strided_slice %0 {offsets = [0, 0], sizes = [8, 1], strides = [1, 1]} : vector<8x3xf32> to vector<8x1xf32>
    %4 = vector.extract_strided_slice %1 {offsets = [0, 0], sizes = [1, 384], strides = [1, 1]} : vector<3x384xf32> to vector<1x384xf32>
    %5 = vector.broadcast %3 : vector<8x1xf32> to vector<8x384xf32>
    %6 = vector.broadcast %4 : vector<1x384xf32> to vector<8x384xf32>
    %7 = arith.mulf %5, %6 : vector<8x384xf32>
    %8 = vector.broadcast %2 : vector<1x384xf32> to vector<8x384xf32>
    %9 = arith.addf %8, %7 : vector<8x384xf32>
    %10 = vector.extract_strided_slice %0 {offsets = [0, 1], sizes = [8, 1], strides = [1, 1]} : vector<8x3xf32> to vector<8x1xf32>
    %11 = vector.extract_strided_slice %1 {offsets = [1, 0], sizes = [1, 384], strides = [1, 1]} : vector<3x384xf32> to vector<1x384xf32>
    %12 = vector.broadcast %10 : vector<8x1xf32> to vector<8x384xf32>
    %13 = vector.broadcast %11 : vector<1x384xf32> to vector<8x384xf32>
    %14 = arith.mulf %12, %13 : vector<8x384xf32>
    %15 = arith.addf %9, %14 : vector<8x384xf32>
    %16 = vector.extract_strided_slice %0 {offsets = [0, 2], sizes = [8, 1], strides = [1, 1]} : vector<8x3xf32> to vector<8x1xf32>
    %17 = vector.extract_strided_slice %1 {offsets = [2, 0], sizes = [1, 384], strides = [1, 1]} : vector<3x384xf32> to vector<1x384xf32>
    %18 = vector.broadcast %16 : vector<8x1xf32> to vector<8x384xf32>
    %19 = vector.broadcast %17 : vector<1x384xf32> to vector<8x384xf32>
    %20 = arith.mulf %18, %19 : vector<8x384xf32>
    %21 = arith.addf %15, %20 : vector<8x384xf32>
    %22 = vector.extract_strided_slice %21 {offsets = [0, 0], sizes = [8, 128], strides = [1, 1]} : vector<8x384xf32> to vector<8x128xf32>
    %cst = arith.constant 5.000000e-01 : f32
    %23 = vector.broadcast %cst : f32 to vector<8x128xf32>
    %24 = arith.mulf %23, %22 : vector<8x128xf32>
    %25 = math.tanh %24 : vector<8x128xf32>
    %cst_5 = arith.constant 5.000000e-01 : f32
    %26 = vector.broadcast %cst_5 : f32 to vector<8x128xf32>
    %27 = arith.mulf %26, %25 : vector<8x128xf32>
    %cst_6 = arith.constant 5.000000e-01 : f32
    %28 = vector.broadcast %cst_6 : f32 to vector<8x128xf32>
    %29 = arith.addf %27, %28 : vector<8x128xf32>
    %30 = vector.extract_strided_slice %21 {offsets = [0, 128], sizes = [8, 128], strides = [1, 1]} : vector<8x384xf32> to vector<8x128xf32>
    %31 = math.tanh %30 : vector<8x128xf32>
    %32 = vector.extract_strided_slice %21 {offsets = [0, 256], sizes = [8, 128], strides = [1, 1]} : vector<8x384xf32> to vector<8x128xf32>
    %cst_7 = arith.constant 5.000000e-01 : f32
    %33 = vector.broadcast %cst_7 : f32 to vector<8x128xf32>
    %34 = arith.mulf %33, %32 : vector<8x128xf32>
    %35 = math.tanh %34 : vector<8x128xf32>
    %cst_8 = arith.constant 5.000000e-01 : f32
    %36 = vector.broadcast %cst_8 : f32 to vector<8x128xf32>
    %37 = arith.mulf %36, %35 : vector<8x128xf32>
    %cst_9 = arith.constant 5.000000e-01 : f32
    %38 = vector.broadcast %cst_9 : f32 to vector<8x128xf32>
    %39 = arith.addf %37, %38 : vector<8x128xf32>
    %40 = arith.mulf %29, %31 : vector<8x128xf32>
    %41 = math.tanh %40 : vector<8x128xf32>
    %42 = arith.mulf %39, %41 : vector<8x128xf32>
    %c0_10 = arith.constant 0 : index
    %c0_11 = arith.constant 0 : index
    %43 = vector.load %arg4[%c0_10, %c0_11] : memref<128x3xf32, #tpu.memory_space<vmem>>, vector<128x3xf32>
    %cst_12 = arith.constant dense<0.000000e+00> : vector<8x3xf32>
    %44 = tpu.matmul %42, %43, %cst_12 {dimension_numbers = #tpu.dot_dimension_numbers<[1], [0], [0], [1], [0, 0, 1, 1], [], []>} : vector<8x128xf32>, vector<128x3xf32>, vector<8x3xf32> -> vector<8x3xf32>
    %c0_13 = arith.constant 0 : index
    %c0_14 = arith.constant 0 : index
    %45 = vector.load %arg5[%c0_13, %c0_14] : memref<1x3xf32, #tpu.memory_space<vmem>>, vector<1x3xf32>
    %46 = vector.broadcast %45 : vector<1x3xf32> to vector<8x3xf32>
    %47 = arith.addf %44, %46 : vector<8x3xf32>
    %c0_15 = arith.constant 0 : index
    %c0_16 = arith.constant 0 : index
    %48 = vector.load %arg6[%c0_15, %c0_16] : memref<8x3xf32, #tpu.memory_space<vmem>>, vector<8x3xf32>
    tpu.vector_store %arg6[%c0_15, %c0_16], %47 {strides = array<i32>} : memref<8x3xf32, #tpu.memory_space<vmem>>, vector<8x3xf32>,
    return
  }
  func.func @transform_0(%arg0: i32) -> (i32, i32) {
    %c0_i32 = arith.constant 0 : i32
    %c0_i32_0 = arith.constant 0 : i32
    return %arg0, %c0_i32 : i32, i32
  }
  func.func @transform_1(%arg0: i32) -> (i32, i32) {
    %c0_i32 = arith.constant 0 : i32
    %c0_i32_0 = arith.constant 0 : i32
    %c0_i32_1 = arith.constant 0 : i32
    return %c0_i32, %c0_i32_0 : i32, i32
  }
  func.func @transform_2(%arg0: i32) -> (i32, i32) {
    %c0_i32 = arith.constant 0 : i32
    %c0_i32_0 = arith.constant 0 : i32
    %c0_i32_1 = arith.constant 0 : i32
    return %c0_i32, %c0_i32_0 : i32, i32
  }
  func.func @transform_3(%arg0: i32) -> (i32, i32) {
    %c0_i32 = arith.constant 0 : i32
    %c0_i32_0 = arith.constant 0 : i32
    %c0_i32_1 = arith.constant 0 : i32
    return %c0_i32, %c0_i32_0 : i32, i32
  }
  func.func @transform_4(%arg0: i32) -> (i32, i32) {
    %c0_i32 = arith.constant 0 : i32
    %c0_i32_0 = arith.constant 0 : i32
    %c0_i32_1 = arith.constant 0 : i32
    return %c0_i32, %c0_i32_0 : i32, i32
  }
  func.func @transform_5(%arg0: i32) -> (i32, i32) {
    %c0_i32 = arith.constant 0 : i32
    %c0_i32_0 = arith.constant 0 : i32
    return %arg0, %c0_i32 : i32, i32
  }
}

</mosaic_0001>

<bundles_post_ra>
// kernel: tpu_custom_call.1
= control target key start
LH: loop header
LB: loop body
LE: loop exit
PB: predicated region body
PF: predicated region fallthrough
CT: control target
= control target key end

     0   :  { %v335_v0 = vmov 0   ;;  %v336_v2 = vmov 2   ;;  %v337_v3 = vmov 1   ;;  %v338_v4 = vmov 0.0   ;;  %s436_s0 = inlined_call_operand.vmem [shape: f32[8,3], index: 0, kind: input, shape index: {}]   ;;  %s437_s3 = inlined_call_operand.vmem [shape: f32[128,3], index: 3, kind: input, shape index: {}]   ;;  %s438_s1 = inlined_call_operand.vmem [shape: f32[3,384], index: 1, kind: input, shape index: {}]   ;;  %s439_s2 = inlined_call_operand.vmem [shape: f32[1,384], index: 2, kind: input, shape index: {}]   ;;  %s440_s4 = inlined_call_operand.vmem [shape: f32[1,3], index: 4, kind: input, shape index: {}]   ;;  %s441_s5 = inlined_call_operand.vmem [shape: f32[8,3], index: 5, kind: output, shape index: {}]  }
   0x1   :  { %323 = vset.pattern.permute.xlu0 %v335_v0  ;;  %v20_v1 = vld [vmem:[%s436_s0] sm:$0xff]  ;;  %325 = vset.pattern.permute.xlu1 %v336_v2  ;;  %v181_v5 = vld [vmem:[%s437_s3 + $0x78] sm:$0xff]  ;;  %v180_v6 = vld [vmem:[%s437_s3 + $0x70] sm:$0xff]  ;;  %vm339_vm0 = vmmov 0   ;;  %v31_v21 = vlaneseq  ;;  %vm259_vm1 = vcmask 23552  }
   0x2   :  { %26 = vperm.xlu0 %323, %v20_v1   ;;  %118 = vperm.xlu1 %325, %v20_v1   ;;  %v179_v7 = vld [vmem:[%s437_s3 + $0x68] sm:$0xff]  ;;  %v178_v8 = vld [vmem:[%s437_s3 + $0x60] sm:$0xff]  ;;  %v177_v9 = vld [vmem:[%s437_s3 + $0x58] sm:$0xff] }
   0x3   :  { %283 = vmatprep.subr.mxu0 %v338_v4  ;;  %v176_v10 = vld [vmem:[%s437_s3 + $0x50] sm:$0xff]  ;;  %v175_v11 = vld [vmem:[%s437_s3 + $0x48] sm:$0xff]  ;;  %v174_v12 = vld [vmem:[%s437_s3 + $0x40] sm:$0xff]  ;;  %315 = vmatprep.mubr.msk.f32.mxu0 %vm339_vm0, %v338_v4  ;;  %v32_v22 = vshrl.u32 %v31_v21, 7 }
   0x4   :  { %284 = vmatpush3.msra.mxu0 %v181_v5  ;;  %v173_v13 = vld [vmem:[%s437_s3 + $0x38] sm:$0xff]  ;;  %v172_v14 = vld [vmem:[%s437_s3 + $0x30] sm:$0xff]  ;;  %v171_v15 = vld [vmem:[%s437_s3 + $0x28] sm:$0xff] }
   0x5   :  { %285 = vmatprep.subr.mxu0 %v338_v4  ;;  %v170_v16 = vld [vmem:[%s437_s3 + $0x20] sm:$0xff]  ;;  %v169_v17 = vld [vmem:[%s437_s3 + $0x18] sm:$0xff]  ;;  %v168_v18 = vld [vmem:[%s437_s3 + $0x10] sm:$0xff]  ;;  %v33_v23 = vsub.s32 0, %v32_v22  ;;  %v37_v25 = vsub.s32 4, %v32_v22  ;;  %v68_v27 = vsub.s32 1, %v32_v22 }
   0x6   :  { %324 = vset.pattern.permute.xlu0 %v337_v3  ;;  %286 = vmatpush3.msra.mxu0 %v180_v6  ;;  %v167_v19 = vld [vmem:[%s437_s3 + $0x8] sm:$0xff]  ;;  %v166_v20 = vld [vmem:[%s437_s3] sm:$0xff]  ;;  %v90_v28 = vsub.s32 5, %v32_v22  ;;  %v72_v30 = vsub.s32 2, %v32_v22  ;;  %v127_v32 = vsub.s32 6, %v32_v22 }
   0x7   :  { %81 = vperm.xlu0 %324, %v20_v1   ;;  %287 = vmatprep.subr.mxu0 %v338_v4  ;;  %v21_v24 = vld [vmem:[%s438_s1] sm:$0x77]  ;;  %v22_v31 = vld [vmem:[%s438_s1 + $0x8] sm:$0x7] }
   0x8   :  { %288 = vmatpush3.msra.mxu0 %v179_v7  ;;  %v34_v26 = vrot.slane %v21_v24, %v33_v23  ;;  %v38_v29 = vrot.slane %v21_v24, %v37_v25  ;;  %v23_v33 = vld [vmem:[%s439_s2] sm:$0x7]  ;;  %v87_v35 = vrot.slane %v21_v24, %v68_v27  ;;  %v91_v36 = vrot.slane %v21_v24, %v90_v28 }
   0x9   :  { %289 = vmatprep.subr.mxu0 %v338_v4  ;;  %v124_v37 = vrot.slane %v21_v24, %v72_v30  ;;  %v42_v38 = vrot.slane %v22_v31, %v33_v23  ;;  %v65_v41 = vrot.slane %v23_v33, %v33_v23  ;;  %v95_v42 = vrot.slane %v22_v31, %v68_v27  ;;  %v265_v22 = vld [vmem:[%s440_s4] ss:$0 sm:$0xff] }
   0xa   :  { %290 = vmatpush3.msra.mxu0 %v178_v8  ;;  %v49_v34 = vrot.slane %v34_v26, %v33_v23  ;;  %v53_v39 = vrot.slane %v38_v29, %v33_v23  ;;  %v128_v43 = vrot.slane %v21_v24, %v127_v32  ;;  %v102_v45 = vrot.slane %v87_v35, %v68_v27 }
   0xb   :  { %326 = vset.pattern.permute.xlu0 %v336_v2  ;;  %291 = vmatprep.subr.mxu0 %v338_v4  ;;  %v106_v46 = vrot.slane %v91_v36, %v68_v27  ;;  %v139_v47 = vrot.slane %v124_v37, %v72_v30  ;;  %v57_v49 = vrot.slane %v42_v38, %v33_v23 }
   0xc   :  { %292 = vmatpush3.msra.mxu0 %v177_v9  ;;  %v69_v50 = vrot.slane %v23_v33, %v68_v27  ;;  %v110_v52 = vrot.slane %v95_v42, %v68_v27  ;;  %v132_v54 = vrot.slane %v22_v31, %v72_v30  ;;  %v143_v55 = vrot.slane %v128_v43, %v72_v30 }
   0xd   :  { %293 = vmatprep.subr.mxu0 %v338_v4  ;;  %v73_v60 = vrot.slane %v23_v33, %v72_v30 }
   0xe   :  { %294 = vmatpush3.msra.mxu0 %v176_v10  ;;  %v147_v0 = vrot.slane %v132_v54, %v72_v30 }
   0xf   :  { %295 = vmatprep.subr.mxu0 %v338_v4 }
  0x10   :  { %296 = vmatpush3.msra.mxu0 %v175_v11 }
  0x11   :  { %297 = vmatprep.subr.mxu0 %v338_v4 }
  0x12   :  { %298 = vmatpush3.msra.mxu0 %v174_v12 }
  0x13   :  { %299 = vmatprep.subr.mxu0 %v338_v4 }
  0x14   :  { %300 = vmatpush3.msra.mxu0 %v173_v13 }
  0x15   :  { %301 = vmatprep.subr.mxu0 %v338_v4 }
  0x16   :  { %302 = vmatpush3.msra.mxu0 %v172_v14 }
  0x17   :  { %303 = vmatprep.subr.mxu0 %v338_v4 }
  0x18   :  { %304 = vmatpush3.msra.mxu0 %v171_v15 }
  0x19   :  { %305 = vmatprep.subr.mxu0 %v338_v4 }
  0x1a   :  { %306 = vmatpush3.msra.mxu0 %v170_v16 }
  0x1b   :  { %307 = vmatprep.subr.mxu0 %v338_v4 }
  0x1c   :  { %308 = vmatpush3.msra.mxu0 %v169_v17 }
  0x1d   :  { %309 = vmatprep.subr.mxu0 %v338_v4 }
  0x1e   :  { %310 = vmatpush3.msra.mxu0 %v168_v18 }
  0x1f   :  { %311 = vmatprep.subr.mxu0 %v338_v4 }
  0x20   :  { %312 = vmatpush3.msra.mxu0 %v167_v19 }
  0x21   :  { %313 = vmatprep.subr.mxu0 %v338_v4 }
  0x22   :  { %314 = vmatpush3.msra.mxu0 %v166_v20 }
  0x7d   :  { %v27_v40 = vpop.permute.xlu0 %26  ;;  %v119_v48 = vpop.permute.xlu1 %118 }
  0x7e   :  { %v58_v44 = vmul.f32 %v49_v34, %v27_v40  ;;  %v59_v51 = vmul.f32 %v53_v39, %v27_v40  ;;  %v148_v59 = vmul.f32 %v139_v47, %v119_v48  ;;  %v60_v61 = vmul.f32 %v57_v49, %v27_v40 }
  0x7f   :  { %v149_v3 = vmul.f32 %v143_v55, %v119_v48  ;;  %v150_v8 = vmul.f32 %v147_v0, %v119_v48 }
  0x80   :  { %v77_v56 = vadd.f32 %v65_v41, %v58_v44  ;;  %v78_v62 = vadd.f32 %v69_v50, %v59_v51  ;;  %v79_v5 = vadd.f32 %v73_v60, %v60_v61 }
  0x82   :  { %v82_v53 = vpop.permute.xlu0 %81 }
  0x83   :  { %v111_v57 = vmul.f32 %v102_v45, %v82_v53  ;;  %v112_v58 = vmul.f32 %v106_v46, %v82_v53  ;;  %v113_v1 = vmul.f32 %v110_v52, %v82_v53 }
  0x85   :  { %v114_v63 = vadd.f32 %v111_v57, %v77_v56  ;;  %v115_v2 = vadd.f32 %v112_v58, %v78_v62  ;;  %v116_v7 = vadd.f32 %v113_v1, %v79_v5 }
  0x87   :  { %v151_v4 = vadd.f32 %v148_v59, %v114_v63  ;;  %v152_v9 = vadd.f32 %v149_v3, %v115_v2  ;;  %v153_v10 = vadd.f32 %v150_v8, %v116_v7 }
  0x89   :  { %v154_v6 = vmul.f32 0.5, %v151_v4  ;;  %v159_v11 = vmul.f32 0.5, %v153_v10 }
  0x8b   :  { %327 = vtanh.f32 %v154_v6 }
  0x8c   :  { %329 = vtanh.f32 %v152_v9 }
  0x8d   :  { %331 = vtanh.f32 %v159_v11 }
  0x98   :  { %v328_v12 = vpop.eup %327 }
  0x99   :  { %v156_v13 = vmul.f32 0.5, %v328_v12  ;;  %v330_v15 = vpop.eup %329 }
  0x9a   :  { %v332_v17 = vpop.eup %331 }
  0x9b   :  { %v157_v14 = vadd.f32 0.5, %v156_v13  ;;  %v161_v18 = vmul.f32 0.5, %v332_v17 }
  0x9d   :  { %v163_v16 = vmul.f32 %v330_v15, %v157_v14  ;;  %v162_v19 = vadd.f32 0.5, %v161_v18 }
  0x9f   :  { %333 = vtanh.f32 %v163_v16 }
  0xac   :  { %v334_v20 = vpop.eup %333 }
  0xad   :  { %v165_v21 = vmul.f32 %v334_v20, %v162_v19 }
  0xaf   :  { %316 = vmatmul.mubr.f32.vlgmr.msra.gmra.mxu0 %v165_v21 }
 0x16f   :  { %v255_v23 = vpop.f32.mrf.mxu0 }
 0x170   :  { %v256_v24 = vadd.f32 %v265_v22, %v255_v23 }
 0x171   :  { %v317_v25 = vpop.f32.mrf.mxu0 }
 0x172   :  { %260 = vst.msk [vmem:[%s441_s5] sm:$0xff] %vm259_vm1, %v256_v24 }

</bundles_post_ra>
